<compile_context>
chip_gen: v6e
topology: v6e:2x2x1
jax: 0.10.0
libtpu: 0.0.40
codegen_flags: <defaults>
</compile_context>

<pallas_src>
import functools

import jax
import jax.numpy as jnp
from jax import lax
from jax.experimental import pallas as pl
from jax.experimental.pallas import tpu as pltpu


def _conv1d_gn_mish_kernel(x_ref, w_ref, b_ref, gamma_ref, beta_ref,
                           gsum_ref, gscat_ref, o_ref, *,
                           kernel_size: int, l_out: int, c_out: int,
                           eps: float, group_elems: int):
    """One batch element: Conv1d -> GroupNorm -> Mish, fully fused."""
    x = x_ref[0].astype(jnp.float32)                          # (C_in, L_pad)

    # ---- Conv1d: K static shifted matmuls (MXU), accumulate in f32 ----
    # Initialize the accumulator with the broadcast bias (saves a separate add).
    acc = jnp.broadcast_to(b_ref[...].astype(jnp.float32), (c_out, l_out))
    for k in range(kernel_size):                              # K is small & static
        acc = acc + jnp.dot(w_ref[k].astype(jnp.float32),
                            x[:, k:k + l_out],
                            preferred_element_type=jnp.float32)

    # ---- GroupNorm (biased variance, per batch item & group) ----
    s1 = jnp.sum(acc, axis=-1, keepdims=True)                 # (C_out, 1)
    s2 = jnp.sum(acc * acc, axis=-1, keepdims=True)           # (C_out, 1)
    g1 = jnp.dot(gsum_ref[...], s1, preferred_element_type=jnp.float32)   # (G, 1)
    g2 = jnp.dot(gsum_ref[...], s2, preferred_element_type=jnp.float32)   # (G, 1)
    inv_n = 1.0 / group_elems
    mean_g = g1 * inv_n
    var_g = g2 * inv_n - mean_g * mean_g
    rstd_g = lax.rsqrt(var_g + eps)                            # EUP slot
    mean_c = jnp.dot(gscat_ref[...], mean_g, preferred_element_type=jnp.float32)
    rstd_c = jnp.dot(gscat_ref[...], rstd_g, preferred_element_type=jnp.float32)

    # Fold the GroupNorm affine into a single per-channel scale/shift:
    #   y = (acc - mean) * rstd * gamma + beta  ==  acc * scale + shift
    scale_c = rstd_c * gamma_ref[...].astype(jnp.float32)      # (C_out, 1)
    shift_c = beta_ref[...].astype(jnp.float32) - mean_c * scale_c
    y = acc * scale_c + shift_c

    # ---- Mish: y * tanh(softplus(y)), torch softplus threshold = 20 ----
    sp = jnp.where(y > 20.0, y, jnp.log1p(jnp.exp(jnp.minimum(y, 20.0))))
    o_ref[0] = (y * jnp.tanh(sp)).astype(o_ref.dtype)


def conv1d_block(x, weight, bias, gamma, beta, *, n_groups=8, eps=1e-5):
    """Pallas equivalent of Conv1dBlock(inp, out, k, n_groups)(x).

    x:      (B, C_in, L) float
    weight: (C_out, C_in, K)   (PyTorch Conv1d layout)
    bias, gamma, beta: (C_out,)
    returns (B, C_out, L_out) float32, L_out = L + 2*(K//2) - K + 1.
    """
    b, c_in, l = x.shape
    c_out, c_in_w, k = weight.shape
    assert c_in_w == c_in, "weight/input channel mismatch"
    assert c_out % n_groups == 0, "GroupNorm needs out_channels % n_groups == 0"

    pad = k // 2
    l_out = l + 2 * pad - k + 1        # == l for odd kernel sizes
    l_pad = l + 2 * pad
    group_size = c_out // n_groups

    # Host-side (XLA) prep: zero-pad spatial axis, reorder weights to (K, C_out, C_in).
    x_pad = jnp.pad(x.astype(jnp.float32), ((0, 0), (0, 0), (pad, pad)))
    w_k = jnp.transpose(weight.astype(jnp.float32), (2, 0, 1))
    b_col = bias.astype(jnp.float32).reshape(c_out, 1)
    g_col = gamma.astype(jnp.float32).reshape(c_out, 1)
    be_col = beta.astype(jnp.float32).reshape(c_out, 1)

    # Static group-membership matrices (channel->group sum, group->channel scatter).
    ch_group = jnp.arange(c_out) // group_size
    gsum = (jnp.arange(n_groups)[:, None] == ch_group[None, :]).astype(jnp.float32)
    gscat = gsum.T

    kernel = functools.partial(
        _conv1d_gn_mish_kernel, kernel_size=k, l_out=l_out, c_out=c_out,
        eps=eps, group_elems=group_size * l_out)

    cost = pl.CostEstimate(
        flops=2 * b * c_out * c_in * k * l_out + 10 * b * c_out * l_out,
        transcendentals=4 * b * c_out * l_out,
        bytes_accessed=4 * (int(x_pad.size) + int(w_k.size) + 4 * c_out
                            + b * c_out * l_out))

    return pl.pallas_call(
        kernel,
        out_shape=jax.ShapeDtypeStruct((b, c_out, l_out), jnp.float32),
        grid=(b,),
        in_specs=[
            pl.BlockSpec((1, c_in, l_pad), lambda i: (i, 0, 0)),
            pl.BlockSpec((k, c_out, c_in), lambda i: (0, 0, 0)),
            pl.BlockSpec((c_out, 1), lambda i: (0, 0)),
            pl.BlockSpec((c_out, 1), lambda i: (0, 0)),
            pl.BlockSpec((c_out, 1), lambda i: (0, 0)),
            pl.BlockSpec((n_groups, c_out), lambda i: (0, 0)),
            pl.BlockSpec((c_out, n_groups), lambda i: (0, 0)),
        ],
        out_specs=pl.BlockSpec((1, c_out, l_out), lambda i: (i, 0, 0)),
        compiler_params=pltpu.CompilerParams(
            dimension_semantics=("parallel",)),
        cost_estimate=cost,
    )(x_pad, w_k, b_col, g_col, be_col, gsum, gscat)


if __name__ == "__main__":
    key = jax.random.PRNGKey(0)
    kx, kw, kb, kg, kbe = jax.random.split(key, 5)

    batch, c_in, c_out, length, ksize, n_groups = 2, 4, 16, 16, 3, 8

    x = jax.random.normal(kx, (batch, c_in, length), dtype=jnp.float32)
    weight = 0.2 * jax.random.normal(kw, (c_out, c_in, ksize), dtype=jnp.float32)
    bias = 0.1 * jax.random.normal(kb, (c_out,), dtype=jnp.float32)
    gamma = 1.0 + 0.1 * jax.random.normal(kg, (c_out,), dtype=jnp.float32)
    beta = 0.1 * jax.random.normal(kbe, (c_out,), dtype=jnp.float32)

    out = conv1d_block(x, weight, bias, gamma, beta, n_groups=n_groups)
    out = jax.block_until_ready(out)

    # ---- pure-JAX reference: nn.Conv1d -> nn.GroupNorm -> nn.Mish ----
    pad = ksize // 2
    y = lax.conv_general_dilated(
        x, weight, window_strides=(1,), padding=[(pad, pad)],
        dimension_numbers=("NCH", "OIH", "NCH"))
    y = y + bias[None, :, None]
    bb, cc, ll = y.shape
    yg = y.reshape(bb, n_groups, (cc // n_groups) * ll)
    mean = yg.mean(axis=-1, keepdims=True)
    var = yg.var(axis=-1, keepdims=True)
    yn = ((yg - mean) / jnp.sqrt(var + 1e-5)).reshape(bb, cc, ll)
    yn = yn * gamma[None, :, None] + beta[None, :, None]
    ref = yn * jnp.tanh(jax.nn.softplus(yn))

    assert out.shape == ref.shape
    err = float(jnp.max(jnp.abs(out - ref)))
    assert jnp.allclose(out, ref, atol=1e-4, rtol=1e-4), f"max abs err {err}"
    print("KERNEL_OK")
</pallas_src>

<mosaic_0001>
module attributes {stable_mosaic.version = 11 : i64} {
  func.func @_conv1d_gn_mish_kernel(%arg0: i32, %arg1: memref<1x4x18xf32, #tpu.memory_space<vmem>>, %arg2: memref<3x16x4xf32, #tpu.memory_space<vmem>>, %arg3: memref<16x1xf32, #tpu.memory_space<vmem>>, %arg4: memref<16x1xf32, #tpu.memory_space<vmem>>, %arg5: memref<16x1xf32, #tpu.memory_space<vmem>>, %arg6: memref<8x16xf32, #tpu.memory_space<vmem>>, %arg7: memref<16x8xf32, #tpu.memory_space<vmem>>, %arg8: memref<1x16x16xf32, #tpu.memory_space<vmem>>) attributes {dimension_semantics = [#tpu.dimension_semantics<parallel>], iteration_bounds = array<i64: 2>, scalar_prefetch = 0 : i64, scratch_operands = 0 : i64, tpu.core_type = #tpu.core_type<tc>, window_params = [{transform_indices = @transform_0, window_bounds = array<i64: 1, 4, 18>}, {pipeline_mode = #tpu.pipeline_mode<synchronous>, transform_indices = @transform_1, window_bounds = array<i64: 3, 16, 4>}, {pipeline_mode = #tpu.pipeline_mode<synchronous>, transform_indices = @transform_2, window_bounds = array<i64: 16, 1>}, {pipeline_mode = #tpu.pipeline_mode<synchronous>, transform_indices = @transform_3, window_bounds = array<i64: 16, 1>}, {pipeline_mode = #tpu.pipeline_mode<synchronous>, transform_indices = @transform_4, window_bounds = array<i64: 16, 1>}, {pipeline_mode = #tpu.pipeline_mode<synchronous>, transform_indices = @transform_5, window_bounds = array<i64: 8, 16>}, {pipeline_mode = #tpu.pipeline_mode<synchronous>, transform_indices = @transform_6, window_bounds = array<i64: 16, 8>}, {transform_indices = @transform_7, window_bounds = array<i64: 1, 16, 16>}]} {
    %c0 = arith.constant 0 : index
    %c0_0 = arith.constant 0 : index
    %c0_1 = arith.constant 0 : index
    %0 = vector.load %arg1[%c0, %c0_0, %c0_1] : memref<1x4x18xf32, #tpu.memory_space<vmem>>, vector<1x4x18xf32>
    %1 = vector.shape_cast %0 : vector<1x4x18xf32> to vector<4x18xf32>
    %c0_2 = arith.constant 0 : index
    %c0_3 = arith.constant 0 : index
    %2 = vector.load %arg3[%c0_2, %c0_3] : memref<16x1xf32, #tpu.memory_space<vmem>>, vector<16x1xf32>
    %3 = vector.shape_cast %2 : vector<16x1xf32> to vector<16x1xf32>
    %4 = vector.broadcast %3 : vector<16x1xf32> to vector<16x16xf32>
    %c0_4 = arith.constant 0 : index
    %c0_5 = arith.constant 0 : index
    %c0_6 = arith.constant 0 : index
    %5 = vector.load %arg2[%c0_4, %c0_5, %c0_6] : memref<3x16x4xf32, #tpu.memory_space<vmem>>, vector<1x16x4xf32>
    %6 = vector.shape_cast %5 : vector<1x16x4xf32> to vector<16x4xf32>
    %7 = vector.extract_strided_slice %1 {offsets = [0, 0], sizes = [4, 16], strides = [1, 1]} : vector<4x18xf32> to vector<4x16xf32>
    %cst = arith.constant dense<0.000000e+00> : vector<16x16xf32>
    %8 = tpu.matmul %6, %7, %cst {dimension_numbers = #tpu.dot_dimension_numbers<[1], [0], [0], [1], [0, 0, 1, 1], [], []>} : vector<16x4xf32>, vector<4x16xf32>, vector<16x16xf32> -> vector<16x16xf32>
    %9 = arith.addf %4, %8 : vector<16x16xf32>
    %c1 = arith.constant 1 : index
    %c0_7 = arith.constant 0 : index
    %c0_8 = arith.constant 0 : index
    %10 = vector.load %arg2[%c1, %c0_7, %c0_8] : memref<3x16x4xf32, #tpu.memory_space<vmem>>, vector<1x16x4xf32>
    %11 = vector.shape_cast %10 : vector<1x16x4xf32> to vector<16x4xf32>
    %12 = vector.extract_strided_slice %1 {offsets = [0, 1], sizes = [4, 16], strides = [1, 1]} : vector<4x18xf32> to vector<4x16xf32>
    %cst_9 = arith.constant dense<0.000000e+00> : vector<16x16xf32>
    %13 = tpu.matmul %11, %12, %cst_9 {dimension_numbers = #tpu.dot_dimension_numbers<[1], [0], [0], [1], [0, 0, 1, 1], [], []>} : vector<16x4xf32>, vector<4x16xf32>, vector<16x16xf32> -> vector<16x16xf32>
    %14 = arith.addf %9, %13 : vector<16x16xf32>
    %c2 = arith.constant 2 : index
    %c0_10 = arith.constant 0 : index
    %c0_11 = arith.constant 0 : index
    %15 = vector.load %arg2[%c2, %c0_10, %c0_11] : memref<3x16x4xf32, #tpu.memory_space<vmem>>, vector<1x16x4xf32>
    %16 = vector.shape_cast %15 : vector<1x16x4xf32> to vector<16x4xf32>
    %17 = vector.extract_strided_slice %1 {offsets = [0, 2], sizes = [4, 16], strides = [1, 1]} : vector<4x18xf32> to vector<4x16xf32>
    %cst_12 = arith.constant dense<0.000000e+00> : vector<16x16xf32>
    %18 = tpu.matmul %16, %17, %cst_12 {dimension_numbers = #tpu.dot_dimension_numbers<[1], [0], [0], [1], [0, 0, 1, 1], [], []>} : vector<16x4xf32>, vector<4x16xf32>, vector<16x16xf32> -> vector<16x16xf32>
    %19 = arith.addf %14, %18 : vector<16x16xf32>
    %cst_13 = arith.constant dense<0.000000e+00> : vector<16xf32>
    %20 = vector.multi_reduction <add>, %19, %cst_13 [1] : vector<16x16xf32> to vector<16xf32>
    %21 = vector.shape_cast %20 : vector<16xf32> to vector<16x1xf32>
    %22 = arith.mulf %19, %19 : vector<16x16xf32>
    %cst_14 = arith.constant dense<0.000000e+00> : vector<16xf32>
    %23 = vector.multi_reduction <add>, %22, %cst_14 [1] : vector<16x16xf32> to vector<16xf32>
    %24 = vector.shape_cast %23 : vector<16xf32> to vector<16x1xf32>
    %c0_15 = arith.constant 0 : index
    %c0_16 = arith.constant 0 : index
    %25 = vector.load %arg6[%c0_15, %c0_16] : memref<8x16xf32, #tpu.memory_space<vmem>>, vector<8x16xf32>
    %cst_17 = arith.constant dense<0.000000e+00> : vector<8x1xf32>
    %26 = tpu.matmul %25, %21, %cst_17 {dimension_numbers = #tpu.dot_dimension_numbers<[1], [0], [0], [1], [0, 0, 1, 1], [], []>} : vector<8x16xf32>, vector<16x1xf32>, vector<8x1xf32> -> vector<8x1xf32>
    %c0_18 = arith.constant 0 : index
    %c0_19 = arith.constant 0 : index
    %27 = vector.load %arg6[%c0_18, %c0_19] : memref<8x16xf32, #tpu.memory_space<vmem>>, vector<8x16xf32>
    %cst_20 = arith.constant dense<0.000000e+00> : vector<8x1xf32>
    %28 = tpu.matmul %27, %24, %cst_20 {dimension_numbers = #tpu.dot_dimension_numbers<[1], [0], [0], [1], [0, 0, 1, 1], [], []>} : vector<8x16xf32>, vector<16x1xf32>, vector<8x1xf32> -> vector<8x1xf32>
    %cst_21 = arith.constant 3.125000e-02 : f32
    %29 = vector.broadcast %cst_21 : f32 to vector<8x1xf32>
    %30 = arith.mulf %26, %29 : vector<8x1xf32>
    %cst_22 = arith.constant 3.125000e-02 : f32
    %31 = vector.broadcast %cst_22 : f32 to vector<8x1xf32>
    %32 = arith.mulf %28, %31 : vector<8x1xf32>
    %33 = arith.mulf %30, %30 : vector<8x1xf32>
    %34 = arith.subf %32, %33 : vector<8x1xf32>
    %cst_23 = arith.constant 9.99999974E-6 : f32
    %35 = vector.broadcast %cst_23 : f32 to vector<8x1xf32>
    %36 = arith.addf %34, %35 : vector<8x1xf32>
    %37 = math.rsqrt %36 : vector<8x1xf32>
    %c0_24 = arith.constant 0 : index
    %c0_25 = arith.constant 0 : index
    %38 = vector.load %arg7[%c0_24, %c0_25] : memref<16x8xf32, #tpu.memory_space<vmem>>, vector<16x8xf32>
    %cst_26 = arith.constant dense<0.000000e+00> : vector<16x1xf32>
    %39 = tpu.matmul %38, %30, %cst_26 {dimension_numbers = #tpu.dot_dimension_numbers<[1], [0], [0], [1], [0, 0, 1, 1], [], []>} : vector<16x8xf32>, vector<8x1xf32>, vector<16x1xf32> -> vector<16x1xf32>
    %c0_27 = arith.constant 0 : index
    %c0_28 = arith.constant 0 : index
    %40 = vector.load %arg7[%c0_27, %c0_28] : memref<16x8xf32, #tpu.memory_space<vmem>>, vector<16x8xf32>
    %cst_29 = arith.constant dense<0.000000e+00> : vector<16x1xf32>
    %41 = tpu.matmul %40, %37, %cst_29 {dimension_numbers = #tpu.dot_dimension_numbers<[1], [0], [0], [1], [0, 0, 1, 1], [], []>} : vector<16x8xf32>, vector<8x1xf32>, vector<16x1xf32> -> vector<16x1xf32>
    %c0_30 = arith.constant 0 : index
    %c0_31 = arith.constant 0 : index
    %42 = vector.load %arg4[%c0_30, %c0_31] : memref<16x1xf32, #tpu.memory_space<vmem>>, vector<16x1xf32>
    %43 = arith.mulf %41, %42 : vector<16x1xf32>
    %c0_32 = arith.constant 0 : index
    %c0_33 = arith.constant 0 : index
    %44 = vector.load %arg5[%c0_32, %c0_33] : memref<16x1xf32, #tpu.memory_space<vmem>>, vector<16x1xf32>
    %45 = arith.mulf %39, %43 : vector<16x1xf32>
    %46 = arith.subf %44, %45 : vector<16x1xf32>
    %47 = vector.broadcast %43 : vector<16x1xf32> to vector<16x16xf32>
    %48 = arith.mulf %19, %47 : vector<16x16xf32>
    %49 = vector.broadcast %46 : vector<16x1xf32> to vector<16x16xf32>
    %50 = arith.addf %48, %49 : vector<16x16xf32>
    %cst_34 = arith.constant 2.000000e+01 : f32
    %51 = vector.broadcast %cst_34 : f32 to vector<16x16xf32>
    %52 = arith.cmpf ogt, %50, %51 : vector<16x16xf32>
    %cst_35 = arith.constant 2.000000e+01 : f32
    %53 = vector.broadcast %cst_35 : f32 to vector<16x16xf32>
    %54 = arith.minimumf %50, %53 : vector<16x16xf32>
    %55 = math.exp %54 : vector<16x16xf32>
    %56 = math.log1p %55 : vector<16x16xf32>
    %57 = arith.select %52, %50, %56 : vector<16x16xi1>, vector<16x16xf32>
    %58 = math.tanh %57 : vector<16x16xf32>
    %59 = arith.mulf %50, %58 : vector<16x16xf32>
    %c0_36 = arith.constant 0 : index
    %c0_37 = arith.constant 0 : index
    %c0_38 = arith.constant 0 : index
    %60 = vector.load %arg8[%c0_36, %c0_37, %c0_38] : memref<1x16x16xf32, #tpu.memory_space<vmem>>, vector<1x16x16xf32>
    %61 = vector.shape_cast %60 : vector<1x16x16xf32> to vector<16x16xf32>
    %62 = vector.shape_cast %59 : vector<16x16xf32> to vector<1x16x16xf32>
    tpu.vector_store %arg8[%c0_36, %c0_37, %c0_38], %62 {strides = array<i32>} : memref<1x16x16xf32, #tpu.memory_space<vmem>>, vector<1x16x16xf32>,
    return
  }
  func.func @transform_0(%arg0: i32) -> (i32, i32, i32) {
    %c0_i32 = arith.constant 0 : i32
    %c0_i32_0 = arith.constant 0 : i32
    %c0_i32_1 = arith.constant 0 : i32
    return %arg0, %c0_i32, %c0_i32_0 : i32, i32, i32
  }
  func.func @transform_1(%arg0: i32) -> (i32, i32, i32) {
    %c0_i32 = arith.constant 0 : i32
    %c0_i32_0 = arith.constant 0 : i32
    %c0_i32_1 = arith.constant 0 : i32
    %c0_i32_2 = arith.constant 0 : i32
    return %c0_i32, %c0_i32_0, %c0_i32_1 : i32, i32, i32
  }
  func.func @transform_2(%arg0: i32) -> (i32, i32) {
    %c0_i32 = arith.constant 0 : i32
    %c0_i32_0 = arith.constant 0 : i32
    %c0_i32_1 = arith.constant 0 : i32
    return %c0_i32, %c0_i32_0 : i32, i32
  }
  func.func @transform_3(%arg0: i32) -> (i32, i32) {
    %c0_i32 = arith.constant 0 : i32
    %c0_i32_0 = arith.constant 0 : i32
    %c0_i32_1 = arith.constant 0 : i32
    return %c0_i32, %c0_i32_0 : i32, i32
  }
  func.func @transform_4(%arg0: i32) -> (i32, i32) {
    %c0_i32 = arith.constant 0 : i32
    %c0_i32_0 = arith.constant 0 : i32
    %c0_i32_1 = arith.constant 0 : i32
    return %c0_i32, %c0_i32_0 : i32, i32
  }
  func.func @transform_5(%arg0: i32) -> (i32, i32) {
    %c0_i32 = arith.constant 0 : i32
    %c0_i32_0 = arith.constant 0 : i32
    %c0_i32_1 = arith.constant 0 : i32
    return %c0_i32, %c0_i32_0 : i32, i32
  }
  func.func @transform_6(%arg0: i32) -> (i32, i32) {
    %c0_i32 = arith.constant 0 : i32
    %c0_i32_0 = arith.constant 0 : i32
    %c0_i32_1 = arith.constant 0 : i32
    return %c0_i32, %c0_i32_0 : i32, i32
  }
  func.func @transform_7(%arg0: i32) -> (i32, i32, i32) {
    %c0_i32 = arith.constant 0 : i32
    %c0_i32_0 = arith.constant 0 : i32
    %c0_i32_1 = arith.constant 0 : i32
    return %arg0, %c0_i32, %c0_i32_0 : i32, i32, i32
  }
}

</mosaic_0001>

<bundles_post_ra>
// kernel: tpu_custom_call.1
= control target key start
LH: loop header
LB: loop body
LE: loop exit
PB: predicated region body
PF: predicated region fallthrough
CT: control target
= control target key end

     0   :  { %12 = vsyncpa [#allocation3], 0  ;;  %s1471_s0 = inlined_call_operand.vmem [shape: f32[2,4,18], index: 0, kind: input, shape index: {}]   ;;  %s1472_s1 = inlined_call_operand.vmem [shape: f32[3,16,4], index: 1, kind: input, shape index: {}]   ;;  %s1473_s2 = inlined_call_operand.vmem [shape: f32[16,1], index: 2, kind: input, shape index: {}]   ;;  %s1474_s3 = inlined_call_operand.vmem [shape: f32[16,1], index: 3, kind: input, shape index: {}]   ;;  %s1475_s4 = inlined_call_operand.vmem [shape: f32[16,1], index: 4, kind: input, shape index: {}]   ;;  %s1476_s5 = inlined_call_operand.vmem [shape: f32[8,16], index: 5, kind: input, shape index: {}]   ;;  %s1477_s6 = inlined_call_operand.vmem [shape: f32[16,8], index: 6, kind: input, shape index: {}]   ;;  %s1478_s7 = inlined_call_operand.hbm [shape: f32[2,16,16], index: 7, kind: output, shape index: {}]  }
   0x1   :  { %14 = vsyncpa [#allocation3 + $0x1], 0  ;;  %s1288_s24 = smov 0   ;;  %s1290_s25 = smov 0  }
   0x2   :  { %s1292_s26 = smov 0   ;;  %s1294_s27 = smov 0  }
   0x3 LB: > { %s1309_s28 = sadd.s32 4294967295, %s1238_s27   ;;  %s1025_s29 = sadd.s32 4294967294, %s1238_s27   ;;  %s1238_s27 = sphi %s1294_s27, %s1484_s27   ;;  %s1234_s26 = sphi %s1292_s26, %s1483_s26   ;;  %s1230_s25 = sphi %s1290_s25, %s1482_s25   ;;  %s1226_s24 = sphi %s1288_s24, %s1481_s24  }
   0x4   : > { %s1313_s30 = sadd.s32 1, %s1238_s27   ;;  %s179_s8 = sadd.s32 1, %s1234_s26 }
   0x5   : > { %s176_s9 = ssub.s32 %s1238_s27, %s1313_s30  ;;  %p189_p0 = scmp.ne.s32.totalorder %s1234_s26, %s1230_s25 }
   0x6   : > { %p177_p1 = scmp.eq.s32.totalorder %s176_s9, 0  ;;  %p190_p2 = scmp.eq.s32.totalorder %s1309_s28, 1 }
   0x7   : > { %p195_p3 = scmp.ne.s32.totalorder %s1230_s25, %s1226_s24  ;;  %p196_p4 = scmp.eq.s32.totalorder %s1025_s29, 1 }
   0x8   : > { %s1324_s10 = scalar_select %p177_p1, %s1234_s26, %s179_s8  }
   0x9   : > { %p1326_p5 = por %p190_p2, %p189_p0  ;;  %p1330_p6 = por %p196_p4, %p195_p3 }
   0xa   : > { %p1028_p7 = scmp.ge.s32.totalorder %s1238_s27, 1  ;;  %p239_p8 = scmp.lt.s32.totalorder %s1238_s27, 3 }
   0xc   : > { %p240_p9 = pnand %p1028_p7, %p239_p8 }
   0xd   : > { %p270_p10 = scmp.lt.s32.totalorder (!%p240_p9), %s1309_s28, 1  ;;  %s1241_s14 = smov (!%p240_p9), 127  }
   0xe   : > { %243 = sbr.rel (%p240_p9) target bundleno = 1102 (0x44e), region = 48  ;;  %s267_s22 = sand.u32 (!%p240_p9), 1, %s1230_s25  }
   0xf   : > { %s1055_s29 = sshll.u32 (!%p240_p9), %s1309_s28, 8  ;;  %s1431_s16 = scalar_lea.sflag (!%p240_p9), [#allocation3], %s267_s22 }
  0x10   : > { %s1426_s15 = scalar_lea.hbm (!%p240_p9), %s1478_s7, %s1055_s29 }
  0x13   : > { %v287_v0 = vld [vmem:[%s1472_s1] sm:$0xff]  ;;  %vm289_vm0 = vcmask 31744   ;;  %v1034_v1 = vld [vmem:[%s1472_s1 + $0x10] sm:$0xff]  ;;  %s271_s17 = scalar_select %p270_p10, %s1309_s28, 1  ;;  %v1240_v2 = vmov 0   ;;  %v276_v3 = vld [vmem:[%s1473_s2 + $0x8] sm:$0xff] }
  0x14   : > { %1079 = vmatprep.mubr.msk.f32.mxu0 %vm289_vm0, %v287_v0  ;;  %1084 = vmatprep.mubr.msk.f32.mxu1 %vm289_vm0, %v1034_v1  ;;  %vm296_vm1 = vcmask 1043456   ;;  %v275_v4 = vld [vmem:[%s1473_s2] sm:$0xff]  ;;  %v288_v6 = vld [vmem:[%s1472_s1 + $0x8] sm:$0xff]  ;;  %v1035_v9 = vld [vmem:[%s1472_s1 + $0x18] sm:$0xff]  ;;  %v1243_v12 = vmov 0.0   ;;  %vm557_vm2 = vcmask 130048  }
  0x15   : > { %1162 = vset.pattern.permute.xlu1 %v1240_v2  ;;  %1163 = vset.pattern.permute.xlu0 %v1240_v2  ;;  %s1030_s20 = sshll.u32 %s271_s17, 2  ;;  %v1039_v7 = vld [vmem:[%s1472_s1 + $0x20] sm:$0xff]  ;;  %s1242_s17 = smov 126   ;;  %v1040_v11 = vld [vmem:[%s1472_s1 + $0x28] sm:$0xff]  ;;  %vm1244_vm3 = vmmov 0   ;;  %vm724_vm4 = vcmask 64512  }
  0x16   : > { %284 = vperm.xlu1 %1162, %v276_v3   ;;  %s273_s23 = scalar_lea.vmem %s1471_s0, %s1030_s20  ;;  %v572_v34 = vld [vmem:[%s1476_s5] sm:$0xff]  ;;  %v723_v42 = vld [vmem:[%s1477_s6 + $0x8] sm:$0xff] }
  0x17   : > { %v274_v5 = vld [vmem:[%s273_s23] sm:$0xf]  ;;  %v882_v50 = vld [vmem:[%s1474_s3 + $0x8] sm:$0xff]  ;;  %s1029_s23 = sshll.u32 %s267_s22, 4 }
  0x18   : > { %380 = vrot.lane.b32.xlu0 %v274_v5, %s1241_s14  ;;  %1077 = vmatprep.subr.msk.mxu0 %vm296_vm1, %v274_v5  ;;  %v722_v38 = vld [vmem:[%s1477_s6] sm:$0xff]  ;;  %v886_v62 = vld [vmem:[%s1475_s4 + $0x8] sm:$0xff]  ;;  %s269_s8 = scalar_lea.vmem [#allocation2], %s1029_s23 }
  0x19   : > { %1078 = vmatpush3.msk.msra.mxu0 %vm296_vm1, %v274_v5  ;;  %v881_v53 = vld [vmem:[%s1474_s3] sm:$0xff]  ;;  %s963_s9 = sshll.u32 %s269_s8, 4  ;;  %s1428_s9 = int_to_ptr.vmem [resolvable:$true] %s963_s9 }
  0x1a   : > { %279 = vperm.xlu1 %1162, %v275_v4   ;;  %1080 = vmatmul.mubr.msk.f32.vlgmr.msra.gmra.mxu0 %vm289_vm0, %v288_v6  ;;  %v885_v58 = vld [vmem:[%s1475_s4] sm:$0xff]  ;;  %s1178_s28 = scalar_lea.vmem %s1428_s9, 256 }
  0x1b   : > { %1089 = vmatprep.mubr.msk.f32.mxu0 %vm289_vm0, %v1039_v7  ;;  %p1179_p11 = scmp.ne.s32.totalorder %s1428_s9, %s1178_s28 }
  0x1c   : > { %470 = vrot.lane.b32.xlu0 %v274_v5, %s1242_s17  ;;  %s1245_s17 = smov [#allocation2]  }
  0x1d   : > { %p1180_p12 = pnand %p1179_p11, %p1326_p5  ;;  %s1182_s18 = sshll.u32 %s1245_s17, 4  ;;  %s1183_s18 = int_to_ptr.vmem [resolvable:$false] %s1182_s18 }
  0x1e   : > { %s1184_s19 = scalar_lea.vmem %s1183_s18, 512  ;;  %p1185_p0 = scmp.lt.s32.totalorder %s1428_s9, %s1183_s18 }
  0x1f   : > { %p1181_p13 = pneg %p1180_p12  ;;  %p1186_p1 = scmp.lt.s32.totalorder %s1184_s19, %s1178_s28 }
  0x21   : > { %p1187_p2 = por %p1186_p1, %p1185_p0 }
  0x23   : > { %p1188_p3 = pnand %p1187_p2, %p1181_p13 }
  0x8a   : > { %v381_v8 = vpop.permute.xlu0 %380 }
  0x8b   : > { %1082 = vmatprep.subr.msk.mxu1 %vm296_vm1, %v381_v8 }
  0x8c   : > { %1083 = vmatpush3.msk.msra.mxu1 %vm296_vm1, %v381_v8 }
  0x8d   : > { %1085 = vmatmul.mubr.msk.f32.vlgmr.msra.gmra.mxu1 %vm289_vm0, %v1035_v9  ;;  %1092 = vmatprep.subr.mxu1 %v1243_v12 }
  0x8e   : > { %v471_v10 = vpop.permute.xlu0 %470  ;;  %1096 = vmatprep.mubr.msk.f32.mxu1 %vm1244_vm3, %v1243_v12 }
  0x8f   : > { %1087 = vmatprep.subr.msk.mxu0 %vm296_vm1, %v471_v10 }
  0x90   : > { %1088 = vmatpush3.msk.msra.mxu0 %vm296_vm1, %v471_v10 }
  0x91   : > { %1090 = vmatmul.mubr.msk.f32.vlgmr.msra.gmra.mxu0 %vm289_vm0, %v1040_v11  ;;  %1099 = vmatprep.subr.mxu0 %v1243_v12  ;;  %v285_v13 = vpop.permute.xlu1 %284 }
  0x92   : > { %1103 = vmatprep.mubr.msk.f32.mxu0 %vm1244_vm3, %v1243_v12 }
  0x95   : > { %v280_v16 = vpop.permute.xlu1 %279 }
  0xda   : > { %v1081_v14 = vpop.f32.mrf.mxu0 }
  0xdb   : > { %v376_v15 = vadd.f32 %v1081_v14, %v285_v13 }
  0xdc   : > { %v366_v17 = vpop.f32.mrf.mxu0 }
  0xdd   : > { %v375_v19 = vadd.f32 %v366_v17, %v280_v16 }
 0x14d   : > { %v1086_v18 = vpop.f32.mrf.mxu1 }
 0x14e   : > { %v466_v20 = vadd.f32 %v1086_v18, %v376_v15 }
 0x14f   : > { %v456_v21 = vpop.f32.mrf.mxu1 }
 0x150   : > { %v465_v23 = vadd.f32 %v456_v21, %v375_v19 }
 0x151   : > { %v1091_v22 = vpop.f32.mrf.mxu0 }
 0x152   : > { %v1377_v24 = vadd.f32 %v1091_v22, %v466_v20 }
 0x153   : > { %v546_v25 = vpop.f32.mrf.mxu0 }
 0x154   : > { %v1379_v26 = vadd.f32 %v546_v25, %v465_v23  ;;  %v561_v27 = vsel %vm557_vm2, %v1377_v24, 0.0  ;;  %v565_v28 = vmul.f32 %v1377_v24, %v1377_v24 }
 0x155   : > { %562 = vadd.xlane.f32.xlu0 %v561_v27 }
 0x156   : > { %v558_v29 = vsel %vm557_vm2, %v1379_v26, 0.0  ;;  %v569_v30 = vsel %vm557_vm2, %v565_v28, 0.0  ;;  %v564_v31 = vmul.f32 %v1379_v26, %v1379_v26 }
 0x157   : > { %559 = vadd.xlane.f32.xlu1 %v558_v29 }
 0x158   : > { %v566_v32 = vsel %vm557_vm2, %v564_v31, 0.0 }
 0x159   : > { %570 = vadd.xlane.f32.xlu0 %v569_v30 }
 0x15d   : > { %567 = vadd.xlane.f32.xlu0 %v566_v32 }
 0x1de   : > { %v563_v33 = vpop.xlane.xlu0 %562 }
 0x1df   : > { %1093 = vmatpush3.msra.mxu1 %v563_v33 }
 0x1e0   : > { %1094 = vmatprep.subr.mxu1 %v1243_v12  ;;  %v560_v35 = vpop.xlane.xlu1 %559 }
 0x1e1   : > { %1095 = vmatpush3.msra.mxu1 %v560_v35 }
 0x1e2   : > { %v571_v36 = vpop.xlane.xlu0 %570  ;;  %1097 = vmatmul.mubr.msk.f32.vlgmr.msra.gmra.mxu1 %vm557_vm2, %v572_v34 }
 0x1e3   : > { %1100 = vmatpush3.msra.mxu0 %v571_v36  ;;  %1108 = vmatprep.mubr.msk.f32.mxu1 %vm724_vm4, %v722_v38 }
 0x1e4   : > { %1101 = vmatprep.subr.mxu0 %v1243_v12 }
 0x1e6   : > { %v568_v37 = vpop.xlane.xlu0 %567 }
 0x1e7   : > { %1102 = vmatpush3.msra.mxu0 %v568_v37 }
 0x1e8   : > { %1104 = vmatmul.mubr.msk.f32.vlgmr.msra.gmra.mxu0 %vm557_vm2, %v572_v34 }
 0x1e9   : > { %1113 = vmatprep.mubr.msk.f32.mxu0 %vm724_vm4, %v722_v38 }
 0x2a2   : > { %v642_v39 = vpop.f32.mrf.mxu1 }
 0x2a3   : > { %v716_v40 = vmul.f32 0.03125, %v642_v39 }
 0x2a4   : > { %v1098_v41 = vpop.f32.mrf.mxu1 }
 0x2a5   : > { %1106 = vmatprep.subr.mxu1 %v716_v40  ;;  %v718_v43 = vmul.f32 %v716_v40, %v716_v40 }
 0x2a6   : > { %1107 = vmatpush3.msra.mxu1 %v716_v40 }
 0x2a7   : > { %1109 = vmatmul.mubr.msk.f32.vlgmr.msra.gmra.mxu1 %vm724_vm4, %v723_v42 }
 0x2a8   : > { %v712_v44 = vpop.f32.mrf.mxu0 }
 0x2a9   : > { %v717_v45 = vmul.f32 0.03125, %v712_v44 }
 0x2aa   : > { %v1105_v46 = vpop.f32.mrf.mxu0 }
 0x2ab   : > { %v719_v47 = vsub.f32 %v717_v45, %v718_v43 }
 0x2ad   : > { %v720_v48 = vadd.f32 1e-05, %v719_v47 }
 0x2af   : > { %1164 = vrsqrt.f32 %v720_v48 }
 0x2bc   : > { %v1165_v49 = vpop.eup %1164 }
 0x2bd   : > { %1111 = vmatprep.subr.mxu0 %v1165_v49 }
 0x2be   : > { %1112 = vmatpush3.msra.mxu0 %v1165_v49 }
 0x2bf   : > { %1114 = vmatmul.mubr.msk.f32.vlgmr.msra.gmra.mxu0 %vm724_vm4, %v723_v42 }
 0x367   : > { %v1110_v52 = vpop.f32.mrf.mxu1 }
 0x369   : > { %v797_v57 = vpop.f32.mrf.mxu1 }
 0x37f   : > { %v1115_v51 = vpop.f32.mrf.mxu0 }
 0x380   : > { %v884_v54 = vmul.f32 %v1115_v51, %v882_v50 }
 0x381   : > { %v872_v55 = vpop.f32.mrf.mxu0 }
 0x382   : > { %v883_v56 = vmul.f32 %v881_v53, %v872_v55  ;;  %898 = vperm.xlu0 %1163, %v884_v54   ;;  %v888_v60 = vmul.f32 %v1110_v52, %v884_v54 }
 0x384   : > { %v887_v59 = vmul.f32 %v883_v56, %v797_v57  ;;  %893 = vperm.xlu1 %1162, %v883_v56   ;;  %v890_v63 = vsub.f32 %v886_v62, %v888_v60 }
 0x386   : > { %v889_v61 = vsub.f32 %v885_v58, %v887_v59 }
 0x388   : > { %905 = vperm.xlu1 %1162, %v889_v61  }
 0x38c   : > { %910 = vperm.xlu1 %1162, %v890_v63  }
 0x3fd   : > { %v899_v2 = vpop.permute.xlu0 %898 }
 0x3fe   : > { %v902_v5 = vmul.f32 %v899_v2, %v1377_v24 }
 0x3ff   : > { %v894_v0 = vpop.permute.xlu1 %893 }
 0x400   : > { %v901_v1 = vmul.f32 %v894_v0, %v1379_v26 }
 0x403   : > { %v906_v3 = vpop.permute.xlu1 %905 }
 0x404   : > { %v913_v4 = vadd.f32 %v906_v3, %v901_v1 }
 0x406   : > { %v917_v6 = vmin.f32 %v913_v4, 20.0  ;;  %vm915_vm6 = vcmp.gt.f32.partialorder %v913_v4, 20.0 }
 0x407   : > { %v911_v7 = vpop.permute.xlu1 %910 }
 0x408   : > { %v919_v8 = vmul.f32 1.442695, %v917_v6  ;;  %v914_v9 = vadd.f32 %v911_v7, %v902_v5 }
 0x40a   : > { %1166 = vpow2.f32 %v919_v8  ;;  %v918_v10 = vmin.f32 %v914_v9, 20.0  ;;  %vm916_vm8 = vcmp.gt.f32.partialorder %v914_v9, 20.0 }
 0x40c   : > { %v921_v11 = vmul.f32 1.442695, %v918_v10 }
 0x40e   : > { %1168 = vpow2.f32 %v921_v11 }
 0x417   : > { %v1167_v12 = vpop.eup %1166 }
 0x418   : > { %v923_v13 = vadd.f32 1.0, %v1167_v12  ;;  %v926_v16 = vmul.f32 -0.5, %v1167_v12  ;;  %v929_v19 = vand.u32 2147483647, %v1167_v12 }
 0x41a   : > { %1170 = vlog2.f32 %v923_v13  ;;  %v927_v17 = vadd.f32 1.0, %v926_v16  ;;  %vm930_vm5 = vcmp.lt.f32.partialorder %v929_v19, 0.0004427343 }
 0x41b   : > { %v1169_v14 = vpop.eup %1168 }
 0x41c   : > { %v932_v15 = vadd.f32 1.0, %v1169_v14  ;;  %v935_v18 = vmul.f32 -0.5, %v1169_v14  ;;  %v928_v22 = vmul.f32 %v1167_v12, %v927_v17  ;;  %v938_v24 = vand.u32 2147483647, %v1169_v14 }
 0x41e   : > { %1172 = vlog2.f32 %v932_v15  ;;  %v936_v23 = vadd.f32 1.0, %v935_v18  ;;  %vm939_vm7 = vcmp.lt.f32.partialorder %v938_v24, 0.0004427343 }
 0x420   : > { %v937_v29 = vmul.f32 %v1169_v14, %v936_v23 }
 0x427   : > { %v1171_v20 = vpop.eup %1170 }
 0x428   : > { %v925_v21 = vmul.f32 0.6931472, %v1171_v20 }
 0x42a   : > { %v931_v25 = vsel %vm930_vm5, %v928_v22, %v925_v21 }
 0x42b   : > { %v1173_v26 = vpop.eup %1172  ;;  %v941_v27 = vsel %vm915_vm6, %v913_v4, %v931_v25 }
 0x42c   : > { %1174 = vtanh.f32 %v941_v27  ;;  %v934_v28 = vmul.f32 0.6931472, %v1173_v26 }
 0x42e   : > { %v940_v30 = vsel %vm939_vm7, %v937_v29, %v934_v28 }
 0x42f   : > { %v942_v31 = vsel %vm916_vm8, %v914_v9, %v940_v30 }
 0x430   : > { %1176 = vtanh.f32 %v942_v31 }
 0x439   : > { %v1175_v32 = vpop.eup %1174 }
 0x43a   : > { %v945_v33 = vmul.f32 %v1175_v32, %v913_v4 }
 0x43c   : > { %947 = vst.msk [vmem:[%s269_s8] sm:$0xff] %vm557_vm2, %v945_v33 }
 0x43d   : > { %v1177_v34 = vpop.eup %1176 }
 0x43e   : > { %v946_v35 = vmul.f32 %v1177_v34, %v914_v9 }
 0x440   : > { %948 = vst.msk [vmem:[%s269_s8 + $0x8] sm:$0xff] %vm557_vm2, %v946_v35 }
 0x441   : > { %1191 = shalt.err (!%p1188_p3)
}
 0x442   : > { %s1192_s20 = scalar_lea.hbm %s1426_s15, 256  ;;  %s1196_s23 = scalar_lea.hbm %s1478_s7, 512 }
 0x443   : > { %p1193_p4 = scmp.ne.s32.totalorder %s1426_s15, %s1192_s20  ;;  %p1197_p9 = scmp.lt.s32.totalorder %s1426_s15, %s1478_s7 }
 0x444   : > { %p1198_p10 = scmp.lt.s32.totalorder %s1196_s23, %s1192_s20 }
 0x445   : > { %p1194_p7 = pnand %p1193_p4, %p1326_p5 }
 0x446   : > { %p1199_p11 = por %p1198_p10, %p1197_p9 }
 0x447   : > { %p1195_p8 = pneg %p1194_p7 }
 0x449   : > { %p1200_p12 = pnand %p1199_p11, %p1195_p8 }
 0x44b   : > { %1203 = shalt.err (!%p1200_p12)
}
 0x44c   : > { %s1246_s13 = smov 128   ;;  %s1247_s14 = smov 8  }
 0x44d   : > { %1116 = dma.vmem_to_hbm [thread:$0]  (%p1326_p5), %s1428_s9, 256, %s1426_s15, %s1431_s16, %s1246_s13, %s1246_s13, %s1247_s14  }
 0x44e PF: > { %p1122_p13 = scmp.ge.s32.totalorder %s1238_s27, 2  ;;  %s978_s28 = sand.u32 1, %s1226_s24  }
 0x44f   : > { %s979_s17 = scalar_lea.sflag [#allocation3], %s978_s28 }
 0x450   : > { %p1119_p0 = pnand %p1122_p13, %p1330_p6 }
 0x452   : > { %p1120_p1 = pneg %p1119_p0 }
 0x454   : > { %1221 = dma.done.wait (%p1120_p1), %s979_s17, 256  }
 0x455   : > { %1223 = vsyncadd (%p1120_p1), %s979_s17, 4294967040  ;;  %p17_p2 = scmp.ge.s32.totalorder %s1313_s30, 4   ;;  %s1481_s24 = smov %s1230_s25 }
 0x456   : > { %s1482_s25 = smov %s1234_s26  ;;  %s1483_s26 = smov %s1324_s10 }
 0x457   : > { %s1484_s27 = smov %s1313_s30  ;;  %19 = sbr.rel (!%p17_p2) target bundleno = 3 (0x3), region = 85 }
 0x45c   :  { %984 = vsyncpa [#allocation3], 1 }
 0x45d   :  { %986 = vsyncpa [#allocation3 + $0x1], 1 }

</bundles_post_ra>
